<compile_context>
chip_gen: v5e
topology: v5e:2x2
jax: 0.10.0
libtpu: 0.0.40
codegen_flags: <defaults>
</compile_context>

<pallas_src>
import functools

import jax
import jax.numpy as jnp
from jax.experimental import pallas as pl
from jax.experimental.pallas import tpu as pltpu


def _postprocess_kernel(logits_ref, box_ref, ts_ref, out_ref, *, class_last):
    """One batch-block step.

    logits_ref : (Bb, Q, C) if class_last else (Bb, C, Q)  (model dtype)
    box_ref    : (2, Bb, Q)  row 0 = center_x, row 1 = width  (model dtype)
    ts_ref     : (Bb, 1) f32 real signal width
    out_ref    : (4, Bb, Q) f32 packed rows = [scores, labels, x0, x1]
    """
    logits = logits_ref[...].astype(jnp.float32)
    ax = 2 if class_last else 1
    C = logits.shape[ax]

    # ---- max / argmax over valid classes [:-1] on raw logits --------------
    # exp is monotone => argmax over logits == argmax over softmax probs.
    cls = jax.lax.broadcasted_iota(jnp.int32, logits.shape, ax)
    valid = cls < (C - 1)                       # drop trailing "no object"
    masked = jnp.where(valid, logits, -jnp.inf)
    max_valid = jnp.max(masked, axis=ax, keepdims=True)

    # softmax max over ALL classes: only the last class can exceed max_valid,
    # so a single-slice elementwise max replaces a second full reduction.
    if class_last:
        last = logits[:, :, C - 1:C]
    else:
        last = logits[:, C - 1:C, :]
    m = jnp.maximum(max_valid, last)

    sum_e = jnp.sum(jnp.exp(logits - m), axis=ax)               # (Bb, Q)

    # first index attaining the max (matches torch .max tie behaviour)
    is_max = (masked == max_valid) & valid
    labels = jnp.min(jnp.where(is_max, cls, C), axis=ax)        # (Bb, Q) i32

    # scores = softmax(logits)[..., :-1].max() = exp(max_valid - m) / sum_e
    scores = jnp.exp(jnp.squeeze(max_valid, axis=ax) - jnp.squeeze(m, axis=ax))
    scores = scores * pl.reciprocal(sum_e, approx=False)        # (Bb, Q)

    # ---- box_cxw_to_xx + scale by the real signal width --------------------
    cx = box_ref[0].astype(jnp.float32)                          # (Bb, Q)
    w = box_ref[1].astype(jnp.float32)                           # (Bb, Q)
    real_w = ts_ref[...]                                         # (Bb, 1)
    half = 0.5 * w
    x0 = (cx - half) * real_w
    x1 = (cx + half) * real_w

    # ---- packed, lane-dense output slab ------------------------------------
    out_ref[0] = scores
    out_ref[1] = labels.astype(jnp.float32)      # small ints, exact as f32
    out_ref[2] = x0
    out_ref[3] = x1


def _choose_block_b(B, sublane, lane):
    """Largest batch block whose padded per-step logits tile stays <= ~8 MiB
    (x2 for double buffering => <= 16 MiB, inside the 32 MiB scoped VMEM we
    request; safe on v5e / v6e / v7x)."""
    row_bytes = (-(-sublane // 8) * 8) * (-(-lane // 128) * 128) * 4
    cap = max(1, (8 << 20) // row_bytes)
    for bb in (512, 256, 128, 64, 32, 16, 8):   # multiples of 8 keep tiling legal
        if bb <= cap and bb < B and B % bb == 0:
            return bb
    return B                                     # small / indivisible batch: one block


def post_process_batched(pred_logits, pred_boxes, target_sizes):
    """Pallas-backed PostProcess.forward returning stacked (B, ...) arrays."""
    assert target_sizes.ndim == 1
    assert pred_logits.shape[0] == target_sizes.shape[0]
    B, Q, C = pred_logits.shape

    # Class-axis layout: put queries in lanes whenever they fill them better.
    class_last = Q < C
    if class_last:
        logits_in = pred_logits                               # (B, Q, C)
        lsub, llane = Q, C
    else:
        logits_in = jnp.transpose(pred_logits, (0, 2, 1))     # (B, C, Q)
        lsub, llane = C, Q

    Bb = _choose_block_b(B, lsub, llane)
    grid = (B // Bb,)

    box_t = jnp.transpose(pred_boxes, (2, 0, 1))              # (2, B, Q)
    ts = target_sizes.astype(jnp.float32).reshape(B, 1)       # (B, 1)

    kernel = functools.partial(_postprocess_kernel, class_last=class_last)

    slab = pl.pallas_call(
        kernel,
        out_shape=jax.ShapeDtypeStruct((4, B, Q), jnp.float32),
        grid=grid,
        in_specs=[
            pl.BlockSpec((Bb, lsub, llane), lambda b: (b, 0, 0)),
            pl.BlockSpec((2, Bb, Q), lambda b: (0, b, 0)),
            pl.BlockSpec((Bb, 1), lambda b: (b, 0)),
        ],
        out_specs=pl.BlockSpec((4, Bb, Q), lambda b: (0, b, 0)),
        compiler_params=pltpu.CompilerParams(
            dimension_semantics=("parallel",),
            vmem_limit_bytes=32 * 1024 * 1024,
        ),
    )(logits_in, box_t, ts)

    scores = slab[0]                                          # (B, Q) f32
    labels = slab[1].astype(jnp.int32)                        # (B, Q) i32
    boxes = jnp.stack([slab[2], slab[3]], axis=-1)            # (B, Q, 2)
    return scores, labels, boxes


def post_process(pred_logits, pred_boxes, target_sizes):
    """Matches the original module's list-of-dicts return signature."""
    scores, labels, boxes = post_process_batched(
        pred_logits, pred_boxes, target_sizes)
    # TODO(synk): per-sample dict unbatching is host-side Python; avoid on hot
    # paths (and ideally fuse this whole post-process into the class-head
    # matmul epilogue) — use post_process_batched there instead.
    return [{'scores': s, 'labels': l, 'boxes': b}
            for s, l, b in zip(scores, labels, boxes)]


def _reference(pred_logits, pred_boxes, target_sizes):
    prob = jax.nn.softmax(pred_logits, axis=-1)
    scores = jnp.max(prob[..., :-1], axis=-1)
    labels = jnp.argmax(prob[..., :-1], axis=-1)
    cx, w = pred_boxes[..., 0], pred_boxes[..., 1]
    boxes = jnp.stack([cx - 0.5 * w, cx + 0.5 * w], axis=-1)
    scale = jnp.stack([target_sizes, target_sizes], axis=1).astype(jnp.float32)
    return scores, labels, boxes * scale[:, None, :]


def _run_case(B, Q, C, dtype, case):
    key = jax.random.fold_in(jax.random.PRNGKey(0), case)
    k1, k2 = jax.random.split(key)
    pred_logits = jax.random.normal(k1, (B, Q, C), dtype=jnp.float32).astype(dtype)
    pred_boxes = jax.nn.sigmoid(
        jax.random.normal(k2, (B, Q, 2), dtype=jnp.float32)).astype(dtype)
    target_sizes = jnp.arange(B, dtype=jnp.int32) * 20 + 480

    scores, labels, boxes = post_process_batched(
        pred_logits, pred_boxes, target_sizes)
    jax.block_until_ready((scores, labels, boxes))

    ref_s, ref_l, ref_b = _reference(pred_logits.astype(jnp.float32),
                                     pred_boxes.astype(jnp.float32),
                                     target_sizes)
    assert jnp.allclose(scores, ref_s, atol=1e-5), ("scores mismatch", case)
    assert jnp.array_equal(labels, ref_l), ("labels mismatch", case)
    assert jnp.allclose(boxes, ref_b, atol=1e-3), ("boxes mismatch", case)


if __name__ == "__main__":
    # class-last layout path (Q < C), f32 inputs
    _run_case(B=2, Q=8, C=32, dtype=jnp.float32, case=0)
    # query-in-lanes layout path (Q >= C), f32 inputs
    _run_case(B=2, Q=128, C=32, dtype=jnp.float32, case=1)
    # native low-precision model dtype (no wrapper upcast)
    _run_case(B=2, Q=8, C=32, dtype=jnp.bfloat16, case=2)

    # list-of-dicts API (original module semantics) still works
    key = jax.random.PRNGKey(0)
    k1, k2 = jax.random.split(key)
    results = post_process(
        jax.random.normal(k1, (2, 8, 32), dtype=jnp.float32),
        jax.nn.sigmoid(jax.random.normal(k2, (2, 8, 2), dtype=jnp.float32)),
        jnp.array([500, 480], dtype=jnp.int32))
    jax.block_until_ready(results[0]['boxes'])

    print("KERNEL_OK")
</pallas_src>

<mosaic_0001>
module attributes {stable_mosaic.version = 11 : i64} {
  func.func @_postprocess_kernel(%arg0: i32, %arg1: memref<2x8x32xf32, #tpu.memory_space<vmem>>, %arg2: memref<2x2x8xf32, #tpu.memory_space<vmem>>, %arg3: memref<2x1xf32, #tpu.memory_space<vmem>>, %arg4: memref<4x2x8xf32, #tpu.memory_space<vmem>>) attributes {dimension_semantics = [#tpu.dimension_semantics<parallel>], iteration_bounds = array<i64: 1>, scalar_prefetch = 0 : i64, scratch_operands = 0 : i64, tpu.core_type = #tpu.core_type<tc>, window_params = [{transform_indices = @transform_0, window_bounds = array<i64: 2, 8, 32>}, {transform_indices = @transform_1, window_bounds = array<i64: 2, 2, 8>}, {transform_indices = @transform_2, window_bounds = array<i64: 2, 1>}, {transform_indices = @transform_3, window_bounds = array<i64: 4, 2, 8>}]} {
    %c0 = arith.constant 0 : index
    %c0_0 = arith.constant 0 : index
    %c0_1 = arith.constant 0 : index
    %0 = vector.load %arg1[%c0, %c0_0, %c0_1] : memref<2x8x32xf32, #tpu.memory_space<vmem>>, vector<2x8x32xf32>
    %1 = tpu.iota {dimensions = array<i32: 2>} : vector<2x8x32xi32>
    %c31_i32 = arith.constant 31 : i32
    %2 = vector.broadcast %c31_i32 : i32 to vector<2x8x32xi32>
    %3 = arith.cmpi slt, %1, %2 : vector<2x8x32xi32>
    %cst = arith.constant 0xFF800000 : f32
    %4 = vector.broadcast %cst : f32 to vector<2x8x32xf32>
    %5 = arith.select %3, %0, %4 : vector<2x8x32xi1>, vector<2x8x32xf32>
    %cst_2 = arith.constant dense<0xFF800000> : vector<2x8xf32>
    %6 = vector.multi_reduction <maximumf>, %5, %cst_2 [2] : vector<2x8x32xf32> to vector<2x8xf32>
    %7 = vector.shape_cast %6 : vector<2x8xf32> to vector<2x8x1xf32>
    %8 = vector.extract_strided_slice %0 {offsets = [0, 0, 31], sizes = [2, 8, 1], strides = [1, 1, 1]} : vector<2x8x32xf32> to vector<2x8x1xf32>
    %9 = arith.maximumf %7, %8 : vector<2x8x1xf32>
    %10 = vector.broadcast %9 : vector<2x8x1xf32> to vector<2x8x32xf32>
    %11 = arith.subf %0, %10 : vector<2x8x32xf32>
    %12 = math.exp %11 : vector<2x8x32xf32>
    %cst_3 = arith.constant dense<0.000000e+00> : vector<2x8xf32>
    %13 = vector.multi_reduction <add>, %12, %cst_3 [2] : vector<2x8x32xf32> to vector<2x8xf32>
    %14 = vector.broadcast %7 : vector<2x8x1xf32> to vector<2x8x32xf32>
    %15 = arith.cmpf oeq, %5, %14 : vector<2x8x32xf32>
    %16 = arith.andi %15, %3 : vector<2x8x32xi1>
    %c32_i32 = arith.constant 32 : i32
    %17 = vector.broadcast %c32_i32 : i32 to vector<2x8x32xi32>
    %18 = arith.select %16, %1, %17 : vector<2x8x32xi1>, vector<2x8x32xi32>
    %cst_4 = arith.constant dense<2147483647> : vector<2x8xi32>
    %19 = vector.multi_reduction <minsi>, %18, %cst_4 [2] : vector<2x8x32xi32> to vector<2x8xi32>
    %20 = vector.shape_cast %7 : vector<2x8x1xf32> to vector<2x8xf32>
    %21 = vector.shape_cast %9 : vector<2x8x1xf32> to vector<2x8xf32>
    %22 = arith.subf %20, %21 : vector<2x8xf32>
    %23 = math.exp %22 : vector<2x8xf32>
    %24 = tpu.reciprocal %13 : vector<2x8xf32> -> vector<2x8xf32>
    %25 = arith.mulf %23, %24 : vector<2x8xf32>
    %c0_5 = arith.constant 0 : index
    %c0_6 = arith.constant 0 : index
    %c0_7 = arith.constant 0 : index
    %26 = vector.load %arg2[%c0_5, %c0_6, %c0_7] : memref<2x2x8xf32, #tpu.memory_space<vmem>>, vector<1x2x8xf32>
    %27 = vector.shape_cast %26 : vector<1x2x8xf32> to vector<2x8xf32>
    %c1 = arith.constant 1 : index
    %c0_8 = arith.constant 0 : index
    %c0_9 = arith.constant 0 : index
    %28 = vector.load %arg2[%c1, %c0_8, %c0_9] : memref<2x2x8xf32, #tpu.memory_space<vmem>>, vector<1x2x8xf32>
    %29 = vector.shape_cast %28 : vector<1x2x8xf32> to vector<2x8xf32>
    %c0_10 = arith.constant 0 : index
    %c0_11 = arith.constant 0 : index
    %30 = vector.load %arg3[%c0_10, %c0_11] : memref<2x1xf32, #tpu.memory_space<vmem>>, vector<2x1xf32>
    %cst_12 = arith.constant 5.000000e-01 : f32
    %31 = vector.broadcast %cst_12 : f32 to vector<2x8xf32>
    %32 = arith.mulf %31, %29 : vector<2x8xf32>
    %33 = arith.subf %27, %32 : vector<2x8xf32>
    %34 = vector.broadcast %30 : vector<2x1xf32> to vector<2x8xf32>
    %35 = arith.mulf %33, %34 : vector<2x8xf32>
    %36 = arith.addf %27, %32 : vector<2x8xf32>
    %37 = vector.broadcast %30 : vector<2x1xf32> to vector<2x8xf32>
    %38 = arith.mulf %36, %37 : vector<2x8xf32>
    %c0_13 = arith.constant 0 : index
    %c0_14 = arith.constant 0 : index
    %c0_15 = arith.constant 0 : index
    %39 = vector.load %arg4[%c0_13, %c0_14, %c0_15] : memref<4x2x8xf32, #tpu.memory_space<vmem>>, vector<1x2x8xf32>
    %40 = vector.shape_cast %39 : vector<1x2x8xf32> to vector<2x8xf32>
    %41 = vector.shape_cast %25 : vector<2x8xf32> to vector<1x2x8xf32>
    tpu.vector_store %arg4[%c0_13, %c0_14, %c0_15], %41 {strides = array<i32>} : memref<4x2x8xf32, #tpu.memory_space<vmem>>, vector<1x2x8xf32>,
    %42 = arith.sitofp %19 : vector<2x8xi32> to vector<2x8xf32>
    %c1_16 = arith.constant 1 : index
    %c0_17 = arith.constant 0 : index
    %c0_18 = arith.constant 0 : index
    %43 = vector.load %arg4[%c1_16, %c0_17, %c0_18] : memref<4x2x8xf32, #tpu.memory_space<vmem>>, vector<1x2x8xf32>
    %44 = vector.shape_cast %43 : vector<1x2x8xf32> to vector<2x8xf32>
    %45 = vector.shape_cast %42 : vector<2x8xf32> to vector<1x2x8xf32>
    tpu.vector_store %arg4[%c1_16, %c0_17, %c0_18], %45 {strides = array<i32>} : memref<4x2x8xf32, #tpu.memory_space<vmem>>, vector<1x2x8xf32>,
    %c2 = arith.constant 2 : index
    %c0_19 = arith.constant 0 : index
    %c0_20 = arith.constant 0 : index
    %46 = vector.load %arg4[%c2, %c0_19, %c0_20] : memref<4x2x8xf32, #tpu.memory_space<vmem>>, vector<1x2x8xf32>
    %47 = vector.shape_cast %46 : vector<1x2x8xf32> to vector<2x8xf32>
    %48 = vector.shape_cast %35 : vector<2x8xf32> to vector<1x2x8xf32>
    tpu.vector_store %arg4[%c2, %c0_19, %c0_20], %48 {strides = array<i32>} : memref<4x2x8xf32, #tpu.memory_space<vmem>>, vector<1x2x8xf32>,
    %c3 = arith.constant 3 : index
    %c0_21 = arith.constant 0 : index
    %c0_22 = arith.constant 0 : index
    %49 = vector.load %arg4[%c3, %c0_21, %c0_22] : memref<4x2x8xf32, #tpu.memory_space<vmem>>, vector<1x2x8xf32>
    %50 = vector.shape_cast %49 : vector<1x2x8xf32> to vector<2x8xf32>
    %51 = vector.shape_cast %38 : vector<2x8xf32> to vector<1x2x8xf32>
    tpu.vector_store %arg4[%c3, %c0_21, %c0_22], %51 {strides = array<i32>} : memref<4x2x8xf32, #tpu.memory_space<vmem>>, vector<1x2x8xf32>,
    return
  }
  func.func @transform_0(%arg0: i32) -> (i32, i32, i32) {
    %c0_i32 = arith.constant 0 : i32
    %c0_i32_0 = arith.constant 0 : i32
    %c0_i32_1 = arith.constant 0 : i32
    return %arg0, %c0_i32, %c0_i32_0 : i32, i32, i32
  }
  func.func @transform_1(%arg0: i32) -> (i32, i32, i32) {
    %c0_i32 = arith.constant 0 : i32
    %c0_i32_0 = arith.constant 0 : i32
    %c0_i32_1 = arith.constant 0 : i32
    return %c0_i32, %arg0, %c0_i32_0 : i32, i32, i32
  }
  func.func @transform_2(%arg0: i32) -> (i32, i32) {
    %c0_i32 = arith.constant 0 : i32
    %c0_i32_0 = arith.constant 0 : i32
    return %arg0, %c0_i32 : i32, i32
  }
  func.func @transform_3(%arg0: i32) -> (i32, i32, i32) {
    %c0_i32 = arith.constant 0 : i32
    %c0_i32_0 = arith.constant 0 : i32
    %c0_i32_1 = arith.constant 0 : i32
    return %c0_i32, %arg0, %c0_i32_0 : i32, i32, i32
  }
}

</mosaic_0001>

<bundles_post_ra>
// kernel: tpu_custom_call.1
= control target key start
LH: loop header
LB: loop body
LE: loop exit
PB: predicated region body
PF: predicated region fallthrough
CT: control target
= control target key end

     0   :  { %8 = vsyncpa [#allocation3], 0  ;;  %s399_s0 = inlined_call_operand.hbm [shape: f32[2,8,32], index: 0, kind: input, shape index: {}]   ;;  %s400_s1 = inlined_call_operand.hbm [shape: f32[2,2,8], index: 1, kind: input, shape index: {}]   ;;  %s401_s2 = inlined_call_operand.vmem [shape: f32[2,1], index: 2, kind: input, shape index: {}]   ;;  %s402_s3 = inlined_call_operand.hbm [shape: f32[4,2,8], index: 3, kind: output, shape index: {}]  }
   0x1   :  { %9 = vsyncpa [#allocation6], 0 }
   0x2   :  { %10 = vsyncpa [#allocation4], 0  ;;  %s15_s14 = sshll.u32 %s399_s0, 4  ;;  %s323_s15 = smov [#allocation2]   ;;  %s16_s14 = int_to_ptr.hbm [resolvable:$true] %s15_s14 }
   0x3   :  { %s17_s16 = sshll.u32 %s323_s15, 4  ;;  %s28_s19 = sshll.u32 %s400_s1, 4  ;;  %s18_s16 = int_to_ptr.vmem [resolvable:$true] %s17_s16  ;;  %s29_s19 = int_to_ptr.hbm [resolvable:$true] %s28_s19 }
   0x4   :  { %s324_s20 = smov 128   ;;  %s325_s21 = smov 8  }
   0x5   :  { %23 = dma.hbm_to_vmem [thread:$0]  %s16_s14, 256, %s18_s16, [#allocation3], %s324_s20, %s324_s20, %s325_s21  }
   0x6   :  { %s326_s22 = smov [#allocation5]   ;;  %s327_s24 = smov 32  }
   0x7   :  { %s30_s23 = sshll.u32 %s326_s22, 4  ;;  %s328_s25 = smov 2   ;;  %s31_s23 = int_to_ptr.vmem [resolvable:$true] %s30_s23 }
   0x8   :  { %36 = dma.hbm_to_vmem [thread:$0]  %s29_s19, 64, %s31_s23, [#allocation6], %s327_s24, %s327_s24, %s328_s25  }
   0x9   :  { %317 = dma.done.wait [#allocation3], 256  }
   0xa   :  { %318 = vsyncadd [#allocation3], 4294967040 }
   0xb   :  { %319 = dma.done.wait [#allocation6], 64  }
   0xc   :  { %320 = vsyncadd [#allocation6], 4294967232  ;;  %v49_v0 = vlaneseq  ;;  %vm54_vm1 = vcmask 261120   ;;  %v47_v2 = vld [vmem:[#allocation2] sm:$0xff]  ;;  %v48_v5 = vld [vmem:[#allocation2 + $0x8] sm:$0xff]  ;;  %v329_v8 = vmov 31  }
   0xd   :  { %229 = vset.pattern.permute.xlu1 %v329_v8  ;;  %230 = vset.pattern.permute.xlu2 %v329_v8  ;;  %s206_s29 = sshll.u32 %s402_s3, 4  ;;  %s207_s29 = int_to_ptr.hbm [resolvable:$true] %s206_s29 }
   0xe   :  { %v361_v1 = vand.u32 127, %v49_v0  ;;  %231 = vset.pattern.permute.xlu0 %v329_v8 }
  0x10   :  { %vm51_vm0 = vcmp.lt.s32.totalorder %v361_v1, 31 }
  0x11   :  { %v52_v3 = vsel %vm51_vm0, %v47_v2, -inf  ;;  %v53_v6 = vsel %vm51_vm0, %v48_v5, -inf }
  0x12   :  { %v55_v4 = vsel %vm54_vm1, %v52_v3, -inf  ;;  %v58_v7 = vsel %vm54_vm1, %v53_v6, -inf }
  0x13   :  { %56 = vmax.xlane.f32.xlu0 %v55_v4 }
  0x1b   :  { %59 = vmax.xlane.f32.xlu0 %v58_v7  ;;  %v330_v7 = vmov 0  }
  0x86   :  { %v57_v9 = vpop.xlane.xlu0 %56 }
  0x87   :  { %vm85_vm2 = vcmp.eq.f32.partialorder %v52_v3, %v57_v9  ;;  %v61_v10 = vmax.f32 %v57_v9, %v47_v2 }
  0x88   :  { %vm87_vm3 = vmand %vm85_vm2, %vm51_vm0 }
  0x89   :  { %65 = vperm.xlu1 %229, %v61_v10   ;;  %v121_v11 = vsub.f32 %v57_v9, %v61_v10  ;;  %v89_v12 = vsel %vm87_vm3, %v361_v1, 32 }
  0x8a   :  { %v91_v13 = vsel %vm54_vm1, %v89_v12, 2147483647 }
  0x8b   :  { %v93_v14 = vshra.s32 %v91_v13, 16  ;;  %v92_v33 = vand.u32 65535, %v91_v13  ;;  %v123_v42 = vmul.f32 1.442695, %v121_v11 }
  0x8d   :  { %v95_v15 = vcvt.s32.f32 %v93_v14  ;;  %v94_v34 = vcvt.s32.f32 %v92_v33 }
  0x8e   :  { %v60_v16 = vpop.xlane.xlu0 %59 }
  0x8f   :  { %v62_v17 = vmax.f32 %v60_v16, %v48_v5  ;;  %96 = vmin.xlane.f32.xlu0 %v95_v15  ;;  %vm86_vm4 = vcmp.eq.f32.partialorder %v53_v6, %v60_v16  ;;  %v160_v6 = vld [vmem:[%s401_s2] sm:$0x3]  ;;  %s331_s2 = smov [#allocation7]  }
  0x90   :  { %vm88_vm5 = vmand %vm86_vm4, %vm51_vm0  ;;  %vm181_vm0 = vcmask 1041409   ;;  %s204_s26 = sshll.u32 %s331_s2, 4  ;;  %s205_s26 = int_to_ptr.vmem [resolvable:$true] %s204_s26 }
  0x91   :  { %70 = vperm.xlu1 %229, %v62_v17   ;;  %v90_v18 = vsel %vm88_vm5, %v361_v1, 32  ;;  %v122_v46 = vsub.f32 %v60_v16, %v62_v17 }
  0x92   :  { %v106_v19 = vsel %vm54_vm1, %v90_v18, 2147483647 }
  0x93   :  { %v108_v20 = vshra.s32 %v106_v19, 16  ;;  %v107_v36 = vand.u32 65535, %v106_v19  ;;  %v125_v52 = vmul.f32 1.442695, %v122_v46 }
  0x95   :  { %v110_v21 = vcvt.s32.f32 %v108_v20  ;;  %v109_v38 = vcvt.s32.f32 %v107_v36 }
  0xbb   :  { %111 = vmin.xlane.f32.xlu1 %v110_v21 }
  0xfb   :  { %v66_v22 = vpop.permute.xlu1 %65 }
  0xfc   :  { %v73_v23 = vsub.f32 %v47_v2, %v66_v22 }
  0xfe   :  { %v75_v24 = vmul.f32 1.442695, %v73_v23  ;;  %v159_v23 = vld [vmem:[#allocation5 + $0x2] sm:$0x3] }
 0x100   :  { %233 = vpow2.f32 %v75_v24 }
 0x102   :  { %v97_v32 = vpop.xlane.xlu0 %96 }
 0x103   :  { %v71_v25 = vpop.permute.xlu1 %70  ;;  %vm98_vm6 = vcmp.eq.f32.partialorder %v95_v15, %v97_v32  ;;  %v103_v9 = vcvt.f32.s32 %v97_v32 }
 0x104   :  { %v74_v26 = vsub.f32 %v48_v5, %v71_v25  ;;  %v99_v35 = vsel %vm98_vm6, %v94_v34, inf  ;;  %v161_v25 = vmul.f32 0.5, %v159_v23 }
 0x105   :  { %v104_v11 = vshll.u32 %v103_v9, 16 }
 0x106   :  { %v234_v27 = vpop.eup %233  ;;  %v77_v28 = vmul.f32 1.442695, %v74_v26  ;;  %v157_v26 = vld [vmem:[#allocation5] sm:$0x3] }
 0x107   :  { %v79_v29 = vsel %vm54_vm1, %v234_v27, 0.0  ;;  %v162_v27 = vsub.f32 %v157_v26, %v161_v25 }
 0x108   :  { %235 = vpow2.f32 %v77_v28  ;;  %80 = vadd.xlane.f32.xlu2 %v79_v29  ;;  %v169_v28 = vadd.f32 %v161_v25, %v157_v26 }
 0x10e   :  { %v236_v30 = vpop.eup %235 }
 0x10f   :  { %v82_v31 = vsel %vm54_vm1, %v236_v30, 0.0  ;;  %vm184_vm1 = vcmask 58368  }
 0x110   :  { %83 = vadd.xlane.f32.xlu2 %v82_v31 }
 0x118   :  { %100 = vmin.xlane.f32.xlu2 %v99_v35 }
 0x12e   :  { %v112_v37 = vpop.xlane.xlu1 %111 }
 0x12f   :  { %vm113_vm7 = vcmp.eq.f32.partialorder %v110_v21, %v112_v37  ;;  %v118_v12 = vcvt.f32.s32 %v112_v37 }
 0x130   :  { %v114_v39 = vsel %vm113_vm7, %v109_v38, inf }
 0x131   :  { %115 = vmin.xlane.f32.xlu0 %v114_v39  ;;  %v119_v15 = vshll.u32 %v118_v12, 16 }
 0x17b   :  { %v81_v40 = vpop.xlane.xlu2 %80 }
 0x17c   :  { %237 = vrcp.f32 %v81_v40  ;;  %v138_v47 = vand.u32 2147483648, %v81_v40  ;;  %v136_v49 = vand.u32 2147483647, %v81_v40  ;;  %vm132_vm9 = vweird.f32 %v81_v40 }
 0x17e   :  { %v139_v53 = vor.u32 1.1754944e-38, %v138_v47  ;;  %vm137_vm11 = vcmp.eq.f32.partialorder %v136_v49, 8.507059e+37 }
 0x182   :  { %v238_v41 = vpop.eup %237 }
 0x183   :  { %v128_v43 = vmul.f32 %v238_v41, %v81_v40  ;;  %v84_v44 = vpop.xlane.xlu2 %83  ;;  %vm133_vm8 = vweird.f32 %v238_v41 }
 0x184   :  { %239 = vrcp.f32 %v84_v44  ;;  %vm134_vm10 = vmor %vm132_vm9, %vm133_vm8  ;;  %v152_v60 = vand.u32 2147483648, %v84_v44  ;;  %v150_v62 = vand.u32 2147483647, %v84_v44  ;;  %vm146_vm13 = vweird.f32 %v84_v44 }
 0x185   :  { %v129_v45 = vsub.f32 1.0, %v128_v43  ;;  %241 = vpow2.f32 %v123_v42 }
 0x186   :  { %243 = vpow2.f32 %v125_v52  ;;  %v153_v0 = vor.u32 1.1754944e-38, %v152_v60  ;;  %vm151_vm15 = vcmp.eq.f32.partialorder %v150_v62, 8.507059e+37 }
 0x187   :  { %v130_v48 = vmul.f32 %v238_v41, %v129_v45 }
 0x189   :  { %v131_v50 = vadd.f32 %v238_v41, %v130_v48 }
 0x18a   :  { %v240_v51 = vpop.eup %239 }
 0x18b   :  { %v142_v54 = vmul.f32 %v240_v51, %v84_v44  ;;  %v135_v55 = vsel %vm134_vm10, %v238_v41, %v131_v50  ;;  %v242_v56 = vpop.eup %241  ;;  %vm147_vm12 = vweird.f32 %v240_v51  ;;  %v101_v8 = vpop.xlane.xlu2 %100 }
 0x18c   :  { %v140_v57 = vsel %vm137_vm11, %v139_v53, %v135_v55  ;;  %vm148_vm14 = vmor %vm146_vm13, %vm147_vm12  ;;  %v244_v3 = vpop.eup %243  ;;  %v102_v10 = vcvt.f32.s32 %v101_v8 }
 0x18d   :  { %v143_v58 = vsub.f32 1.0, %v142_v54  ;;  %v155_v59 = vmul.f32 %v242_v56, %v140_v57 }
 0x18e   :  { %v105_v13 = vadd.s32 %v104_v11, %v102_v10 }
 0x18f   :  { %v144_v61 = vmul.f32 %v240_v51, %v143_v58  ;;  %174 = vperm.xlu2 %230, %v155_v59  }
 0x190   :  { %v186_v17 = vcvt.s32.f32 %v105_v13 }
 0x191   :  { %v145_v63 = vadd.f32 %v240_v51, %v144_v61 }
 0x192   :  { %v190_v20 = vperm.slane %v186_v17, %v361_v1 }
 0x193   :  { %v149_v2 = vsel %vm148_vm14, %v240_v51, %v145_v63 }
 0x194   :  { %v154_v4 = vsel %vm151_vm15, %v153_v0, %v149_v2 }
 0x195   :  { %v156_v5 = vmul.f32 %v244_v3, %v154_v4 }
 0x197   :  { %177 = vperm.xlu0 %231, %v156_v5   ;;  %232 = vset.pattern.permute.xlu2 %v330_v7 }
 0x198   :  { %165 = vperm.xlu2 %232, %v160_v6  }
 0x1a4   :  { %v116_v14 = vpop.xlane.xlu0 %115 }
 0x1a5   :  { %v117_v16 = vcvt.f32.s32 %v116_v14 }
 0x1a7   :  { %v120_v18 = vadd.s32 %v119_v15, %v117_v16 }
 0x1a9   :  { %v187_v19 = vcvt.s32.f32 %v120_v18 }
 0x1ab   :  { %v191_v21 = vperm.slane %v187_v19, %v361_v1 }
 0x1ad   :  { %v192_v22 = vsel %vm181_vm0, %v191_v21, %v190_v20 }
 0x1ae   :  { %195 = vst.msk [vmem:[#allocation7 + $0x2] sm:$0x3] %vm184_vm1, %v192_v22 }
 0x1e9   :  { %v175_v24 = vpop.permute.xlu2 %174 }
 0x1ea   :  { %v179_v33 = vperm.slane %v175_v24, %v361_v1 }
 0x1f2   :  { %v166_v29 = vpop.permute.xlu2 %165 }
 0x1f3   :  { %v168_v30 = vmul.f32 %v166_v29, %v162_v27  ;;  %v170_v31 = vmul.f32 %v169_v28, %v166_v29 }
 0x1f5   :  { %197 = vst.msk [vmem:[#allocation7 + $0x4] sm:$0x3] %vm184_vm1, %v168_v30 }
 0x1f6   :  { %199 = vst.msk [vmem:[#allocation7 + $0x6] sm:$0x3] %vm184_vm1, %v170_v31 }
 0x209   :  { %v178_v32 = vpop.permute.xlu0 %177 }
 0x20a   :  { %v180_v34 = vperm.slane %v178_v32, %v361_v1 }
 0x20c   :  { %v182_v35 = vsel %vm181_vm0, %v180_v34, %v179_v33 }
 0x20d   :  { %185 = vst.msk [vmem:[#allocation7] sm:$0x3] %vm184_vm1, %v182_v35 }
 0x20e   :  { %212 = dma.vmem_to_hbm [thread:$0]  %s205_s26, 128, %s207_s29, [#allocation4], %s327_s24, %s327_s24, %s328_s25  }
 0x20f   :  { %321 = dma.done.wait [#allocation4], 128  }
 0x210   :  { %322 = vsyncadd [#allocation4], 4294967168 }
 0x211   :  { %217 = vsyncpa [#allocation3], 1 }
 0x212   :  { %218 = vsyncpa [#allocation6], 1 }
 0x213   :  { %219 = vsyncpa [#allocation4], 1 }

</bundles_post_ra>
